<compile_context>
chip_gen: v6e
topology: v6e:2x2x1
jax: 0.10.0
libtpu: 0.0.40
codegen_flags: <defaults>
</compile_context>

<pallas_src>
import math

import jax
import jax.numpy as jnp
from jax.experimental import pallas as pl
from jax.experimental.pallas import tpu as pltpu

EMB = 512
DEPTH = 12
HEADS = 8
HEAD_DIM = EMB // HEADS            # 64
HALF = HEAD_DIM // 2               # 32  (reference RoPE acts on 32-dim halves)
QUARTER = HEAD_DIM // 4            # 16  (rotate_half swaps 16-lane blocks)
MLP_DIM = 1024
IN_DIM = 156
PAD_IN = 256                       # lane-aligned K for the patch-embed matmul
OUT_PROJ_DIM = 192
LN_EPS = 1e-5
PROJ_NAMES = ("speakers", "gender", "emotion", "accent", "background_noise")
PROJ_DIMS = ((192, 256), (256, 256), (256, 128), (128, 128))
# Explicit scoped-VMEM limit: comfortably covers double-buffered bf16 per-layer
# weights (~8 MiB) on all generations and exceeds v5e's 16 MiB default.
VMEM_LIMIT = 32 * 1024 * 1024


# --------------------------------- helpers ----------------------------------
def _gelu(y):
    # TODO(synk): tanh approximation; PyTorch nn.GELU default is exact erf.
    c = math.sqrt(2.0 / math.pi)
    return 0.5 * y * (1.0 + jnp.tanh(c * (y + 0.044715 * y * y * y)))


def _layernorm(x, g, b):
    mu = jnp.mean(x, axis=-1, keepdims=True)
    var = jnp.mean((x - mu) ** 2, axis=-1, keepdims=True)
    return (x - mu) * jax.lax.rsqrt(var + LN_EPS) * g + b


# ---------------- RoPE roll-convention probe + full-width tables -------------
_ROLL_MATCHES_JNP = None


def _roll_matches_jnp():
    """One-time hardware probe (run outside jit): does pltpu.roll follow
    jnp.roll semantics, i.e. out[j] = x[(j - shift) % n]?  Fails loudly if the
    result matches neither convention (no silent fallback)."""
    global _ROLL_MATCHES_JNP
    if _ROLL_MATCHES_JNP is None:
        def probe(x_ref, o_ref):
            o_ref[...] = pltpu.roll(x_ref[...], 1, axis=1)

        xp = jnp.tile(jnp.arange(128, dtype=jnp.float32)[None, :], (8, 1))
        yp = pl.pallas_call(
            probe, out_shape=jax.ShapeDtypeStruct((8, 128), jnp.float32))(xp)
        first = float(yp[0, 0])
        if first == 127.0:          # out[j] = x[(j - shift) % n]  (jnp.roll)
            _ROLL_MATCHES_JNP = True
        elif first == 1.0:          # out[j] = x[(j + shift) % n]
            _ROLL_MATCHES_JNP = False
        else:
            raise RuntimeError(
                f"unrecognized pltpu.roll convention (probe value {first})")
    return _ROLL_MATCHES_JNP


def rope_tables(seq_len):
    """Full-width (L, EMB) tables.  Inside the kernel
         rope(t) = t*cos + roll(t, EMB-16)*sin_a + roll(t, 16)*sin_b
    which reproduces the PyTorch reference exactly: the reference applies a
    32-frequency RoPE (inv_freq over the full 64-dim head) to EACH 32-dim half
    of every head, with rotate_half swapping 16-lane blocks inside that half —
    so the partner offset is 16 while the cos/sin period is 32.  The attention
    score scale 1/sqrt(HEAD_DIM) is folded in (q and k each carry its sqrt)."""
    inv_freq = 1.0 / (10000.0 ** (jnp.arange(0, HEAD_DIM, 2, dtype=jnp.float32)
                                  / HEAD_DIM))                       # (32,)
    pos = jnp.arange(seq_len, dtype=jnp.float32)
    sinusoid = pos[:, None] * inv_freq[None, :]                      # (L, 32)
    reps = EMB // HALF                                               # 16
    cosf = jnp.tile(jnp.cos(sinusoid), (1, reps))                    # (L, EMB)
    sinf = jnp.tile(jnp.sin(sinusoid), (1, reps))
    first = (jnp.arange(EMB) % HALF < QUARTER)[None, :]
    sin_a = jnp.where(first, -sinf, 0.0)    # multiplies partner t[:, j + 16]
    sin_b = jnp.where(first, 0.0, sinf)     # multiplies partner t[:, j - 16]
    if not _roll_matches_jnp():             # opposite rotation convention
        sin_a, sin_b = sin_b, sin_a
    scale = HEAD_DIM ** -0.25               # folded attention score scale
    return cosf * scale, sin_a * scale, sin_b * scale


# ---------- whole SpeechSim trunk as one depth-gridded pallas_call -----------
def speechsim_fused(params, x_pad, cosf, sina, sinb, batch, seqlen):
    B, L = batch, seqlen
    M = B * L

    def kernel(x_ref, cos_ref, sina_ref, sinb_ref, wpe_ref, hw_ref, hb_ref,
               ln1g_ref, ln1b_ref, qkvw_ref, qkvb_ref, outw_ref, outb_ref,
               ln2g_ref, ln2b_ref, w1_ref, b1_ref, w2_ref, b2_ref,
               feats_ref, h_scr):
        d = pl.program_id(0)

        @pl.when(d == 0)
        def _():
            # patch-embed (no bias) feeds the resident activation scratch
            h_scr[...] = jnp.dot(x_ref[...].astype(jnp.bfloat16), wpe_ref[...],
                                 preferred_element_type=jnp.float32)
            feats_ref[...] = jnp.zeros_like(feats_ref)

        h = h_scr[...]                                      # (M, EMB) f32
        cos_t = cos_ref[...]
        sina_t = sina_ref[...]
        sinb_t = sinb_ref[...]

        def rope(t):
            # partner(t)[j] = t[j ^ 16] within each 32-lane group, realised as
            # two masked XLU lane rotations (no concatenation of halves).
            fwd = pltpu.roll(t, EMB - QUARTER, axis=1)      # t[:, j + 16]
            bwd = pltpu.roll(t, QUARTER, axis=1)            # t[:, j - 16]
            return t * cos_t + fwd * sina_t + bwd * sinb_t

        # ----- attention branch: LN1 + QKV + RoPE attention + out-proj -----
        xn = _layernorm(h, ln1g_ref[...], ln1b_ref[...]).astype(jnp.bfloat16)
        qkv = (jnp.dot(xn, qkvw_ref[...], preferred_element_type=jnp.float32)
               + qkvb_ref[...])                             # (M, 3*EMB) f32
        q = qkv[:, :EMB]
        k = qkv[:, EMB:2 * EMB]
        v = qkv[:, 2 * EMB:]
        wo = outw_ref[...]                                  # (EMB, EMB) bf16
        outb = outb_ref[...]                                # (1, EMB) f32

        rows = []
        for bi in range(B):
            r0 = bi * L
            qr = rope(q[r0:r0 + L])
            kr = rope(k[r0:r0 + L])
            vb = v[r0:r0 + L]
            acc = jnp.zeros((L, EMB), jnp.float32)
            for hd in range(HEADS):
                c0 = hd * HEAD_DIM
                qh = qr[:, c0:c0 + HEAD_DIM]
                kh = kr[:, c0:c0 + HEAD_DIM]
                vh = vb[:, c0:c0 + HEAD_DIM]
                # score scale already folded into the RoPE tables
                s = jax.lax.dot_general(qh, kh, (((1,), (1,)), ((), ())),
                                        preferred_element_type=jnp.float32)
                s = s - jnp.max(s, axis=-1, keepdims=True)
                p = jnp.exp(s)
                p = p * pl.reciprocal(jnp.sum(p, axis=-1, keepdims=True),
                                      approx=True)
                oh = jnp.dot(p, vh, preferred_element_type=jnp.float32)
                # per-head out-projection accumulated lane-dense (no concat)
                acc = acc + jnp.dot(oh.astype(jnp.bfloat16),
                                    wo[c0:c0 + HEAD_DIM, :],
                                    preferred_element_type=jnp.float32)
            rows.append(h[r0:r0 + L] + acc + outb)          # residual add
        h = jnp.concatenate(rows, axis=0) if B > 1 else rows[0]

        # ----- MLP branch: LN2 + MLP1 + GELU + MLP2 + residual --------------
        xn2 = _layernorm(h, ln2g_ref[...], ln2b_ref[...]).astype(jnp.bfloat16)
        mid = _gelu(jnp.dot(xn2, w1_ref[...],
                            preferred_element_type=jnp.float32) + b1_ref[...])
        h = h + (jnp.dot(mid.astype(jnp.bfloat16), w2_ref[...],
                         preferred_element_type=jnp.float32) + b2_ref[...])
        h_scr[...] = h

        # ----- final layer: mean-pool over L and the output head ------------
        @pl.when(d == DEPTH - 1)
        def _():
            pooled = []
            for bi in range(B):
                pooled.append(jnp.mean(h[bi * L:(bi + 1) * L], axis=0,
                                       keepdims=True))
            pooled = jnp.concatenate(pooled, axis=0) if B > 1 else pooled[0]
            feats_ref[...] = (jnp.dot(pooled.astype(jnp.bfloat16), hw_ref[...],
                                      preferred_element_type=jnp.float32)
                              + hb_ref[...])

    inv = lambda d: (0, 0)           # grid-invariant operands (fetched once)
    perd = lambda d: (d, 0, 0)       # per-layer weights streamed over depth

    return pl.pallas_call(
        kernel,
        out_shape=jax.ShapeDtypeStruct((B, OUT_PROJ_DIM), jnp.float32),
        grid=(DEPTH,),
        in_specs=[
            pl.BlockSpec((M, PAD_IN), inv),                 # x (padded)
            pl.BlockSpec((L, EMB), inv),                    # cos
            pl.BlockSpec((L, EMB), inv),                    # sin_a
            pl.BlockSpec((L, EMB), inv),                    # sin_b
            pl.BlockSpec((PAD_IN, EMB), inv),               # patch-embed w
            pl.BlockSpec((EMB, OUT_PROJ_DIM), inv),         # head w
            pl.BlockSpec((1, OUT_PROJ_DIM), inv),           # head b
            pl.BlockSpec((None, 1, EMB), perd),             # ln1_g
            pl.BlockSpec((None, 1, EMB), perd),             # ln1_b
            pl.BlockSpec((None, EMB, 3 * EMB), perd),       # qkv_w
            pl.BlockSpec((None, 1, 3 * EMB), perd),         # qkv_b
            pl.BlockSpec((None, EMB, EMB), perd),           # out_w
            pl.BlockSpec((None, 1, EMB), perd),             # out_b
            pl.BlockSpec((None, 1, EMB), perd),             # ln2_g
            pl.BlockSpec((None, 1, EMB), perd),             # ln2_b
            pl.BlockSpec((None, EMB, MLP_DIM), perd),       # mlp1_w
            pl.BlockSpec((None, 1, MLP_DIM), perd),         # mlp1_b
            pl.BlockSpec((None, MLP_DIM, EMB), perd),       # mlp2_w
            pl.BlockSpec((None, 1, EMB), perd),             # mlp2_b
        ],
        out_specs=pl.BlockSpec((B, OUT_PROJ_DIM), inv),
        scratch_shapes=[pltpu.VMEM((M, EMB), jnp.float32)],  # resident activations
        compiler_params=pltpu.CompilerParams(
            dimension_semantics=("arbitrary",),             # sequential over depth
            vmem_limit_bytes=VMEM_LIMIT),
    )(x_pad, cosf, sina, sinb,
      params["patch_embed_w"], params["head_w"], params["head_b"],
      params["ln1_g"], params["ln1_b"], params["qkv_w"], params["qkv_b"],
      params["out_w"], params["out_b"], params["ln2_g"], params["ln2_b"],
      params["mlp1_w"], params["mlp1_b"], params["mlp2_w"], params["mlp2_b"])


# -------- all five projector MLPs + cosine grams in one batched kernel -------
def _projector_kernel(x_ref, w1_ref, b1_ref, w2_ref, b2_ref, w3_ref, b3_ref,
                      w4_ref, b4_ref, g_ref):
    def lin(z, w_ref, b_ref):
        return (jnp.dot(z.astype(jnp.bfloat16), w_ref[...],
                        preferred_element_type=jnp.float32) + b_ref[...])

    z = x_ref[...].astype(jnp.float32)
    z = _gelu(lin(z, w1_ref, b1_ref))
    z = _gelu(lin(z, w2_ref, b2_ref))
    z = _gelu(lin(z, w3_ref, b3_ref))
    z = lin(z, w4_ref, b4_ref)
    zn = z * jax.lax.rsqrt(jnp.sum(z * z, axis=-1, keepdims=True) + 1e-12)
    g_ref[...] = jax.lax.dot_general(zn, zn, (((1,), (1,)), ((), ())),
                                     preferred_element_type=jnp.float32)


def projector_grams(feats, proj_w, proj_b):
    w1, w2, w3, w4 = proj_w
    b1, b2, b3, b4 = proj_b
    nproj = w1.shape[0]
    bsz = feats.shape[0]
    pmap = lambda p: (p, 0, 0)

    return pl.pallas_call(
        _projector_kernel,
        out_shape=jax.ShapeDtypeStruct((nproj, bsz, bsz), jnp.float32),
        grid=(nproj,),
        in_specs=[pl.BlockSpec((bsz, w1.shape[1]), lambda p: (0, 0)),
                  pl.BlockSpec((None,) + w1.shape[1:], pmap),
                  pl.BlockSpec((None,) + b1.shape[1:], pmap),
                  pl.BlockSpec((None,) + w2.shape[1:], pmap),
                  pl.BlockSpec((None,) + b2.shape[1:], pmap),
                  pl.BlockSpec((None,) + w3.shape[1:], pmap),
                  pl.BlockSpec((None,) + b3.shape[1:], pmap),
                  pl.BlockSpec((None,) + w4.shape[1:], pmap),
                  pl.BlockSpec((None,) + b4.shape[1:], pmap)],
        out_specs=pl.BlockSpec((None, bsz, bsz), pmap),
        compiler_params=pltpu.CompilerParams(
            dimension_semantics=("parallel",),
            vmem_limit_bytes=VMEM_LIMIT),
    )(feats, w1, b1, w2, b2, w3, b3, w4, b4)


# --------------------------------- parameters --------------------------------
def init_params(key):
    keys = iter(jax.random.split(key, 32))

    def dense(shape, scale=0.02):
        # weights stored bf16 (halves weight DMA; f32 accumulation in-kernel)
        return (jax.random.normal(next(keys), shape, jnp.float32)
                * scale).astype(jnp.bfloat16)

    params = {
        # pre-padded once to a lane-aligned K=256 (hoisted out of the forward)
        "patch_embed_w": jnp.pad(
            jax.random.normal(next(keys), (IN_DIM, EMB), jnp.float32) * 0.02,
            ((0, PAD_IN - IN_DIM), (0, 0))).astype(jnp.bfloat16),
        # per-layer weights stacked on a leading depth axis -> streamed by grid
        "ln1_g": jnp.ones((DEPTH, 1, EMB), jnp.float32),
        "ln1_b": jnp.zeros((DEPTH, 1, EMB), jnp.float32),
        "qkv_w": dense((DEPTH, EMB, 3 * EMB)),
        "qkv_b": jnp.zeros((DEPTH, 1, 3 * EMB), jnp.float32),
        "out_w": dense((DEPTH, EMB, EMB)),
        "out_b": jnp.zeros((DEPTH, 1, EMB), jnp.float32),
        "ln2_g": jnp.ones((DEPTH, 1, EMB), jnp.float32),
        "ln2_b": jnp.zeros((DEPTH, 1, EMB), jnp.float32),
        "mlp1_w": dense((DEPTH, EMB, MLP_DIM)),
        "mlp1_b": jnp.zeros((DEPTH, 1, MLP_DIM), jnp.float32),
        "mlp2_w": dense((DEPTH, MLP_DIM, EMB)),
        "mlp2_b": jnp.zeros((DEPTH, 1, EMB), jnp.float32),
        "head_w": dense((EMB, OUT_PROJ_DIM)),
        "head_b": jnp.zeros((1, OUT_PROJ_DIM), jnp.float32),
    }
    # all five projector MLPs stacked on a leading axis -> one batched kernel
    nproj = len(PROJ_NAMES)
    proj_w, proj_b = [], []
    for fi, fo in PROJ_DIMS:
        proj_w.append(dense((nproj, fi, fo)))
        proj_b.append(jax.random.normal(next(keys), (nproj, 1, fo),
                                        jnp.float32) * 0.02)
    params["proj_w"] = tuple(proj_w)
    params["proj_b"] = tuple(proj_b)
    return params


# ----------------------------------- forward ---------------------------------
def mad_speech_forward(params, x, rope_tabs):
    B, L, _ = x.shape
    M = B * L
    cosf, sin_a, sin_b = rope_tabs

    # SpeechSim trunk: ONE pallas_call (patch-embed + 12 blocks + pool + head)
    x_pad = jnp.pad(x.reshape(M, IN_DIM), ((0, 0), (0, PAD_IN - IN_DIM)))
    feats = speechsim_fused(params, x_pad, cosf, sin_a, sin_b, B, L)  # (B, 192)

    # Projectors + diversity scores (one batched kernel emits all 5 grams)
    grams = projector_grams(feats, params["proj_w"], params["proj_b"])
    n = B
    scores = {}
    for i, name in enumerate(PROJ_NAMES):
        g = grams[i]
        if name == "gender":
            # TODO(synk): avg_cosine is not defined in the reference source; mean
            # off-diagonal pairwise cosine similarity is used.
            scores[name] = (jnp.sum(g) - jnp.trace(g)) / (n * (n - 1))
        else:
            # TODO(synk): vendi_score is not defined in the reference source; the
            # standard cosine-kernel Vendi score (exp of eigenvalue entropy) is
            # used.  Eigendecomposition has no Pallas equivalent -> plain JAX.
            eig = jnp.clip(jnp.linalg.eigvalsh(g / n), 0.0, None)
            logs = jnp.log(jnp.maximum(eig, 1e-12))
            scores[name] = jnp.exp(-jnp.sum(jnp.where(eig > 1e-12, eig * logs, 0.0)))
    return scores


if __name__ == "__main__":
    key = jax.random.PRNGKey(0)
    pkey, xkey = jax.random.split(key)
    params = init_params(pkey)

    B, L = 2, 8
    x = jax.random.normal(xkey, (B, L, IN_DIM), jnp.float32)
    rope_tabs = rope_tables(L)   # built outside jit (probes the roll convention)

    fwd = jax.jit(mad_speech_forward)
    out = fwd(params, x, rope_tabs)
    out = jax.block_until_ready(out)
    print("KERNEL_OK")
</pallas_src>

<mosaic_0001>
module attributes {stable_mosaic.version = 11 : i64} {
  func.func @probe(%arg0: memref<8x128xf32, #tpu.memory_space<vmem>>, %arg1: memref<8x128xf32, #tpu.memory_space<vmem>>) attributes {dimension_semantics = [], scalar_prefetch = 0 : i64, scratch_operands = 0 : i64, tpu.core_type = #tpu.core_type<tc>} {
    %c0 = arith.constant 0 : index
    %c0_0 = arith.constant 0 : index
    %0 = vector.load %arg0[%c0, %c0_0] : memref<8x128xf32, #tpu.memory_space<vmem>>, vector<8x128xf32>
    %c1_i32 = arith.constant 1 : i32
    %1 = tpu.dynamic_rotate %0 by %c1_i32 dim 1 : vector<8x128xf32>, i32 -> vector<8x128xf32>
    %c0_1 = arith.constant 0 : index
    %c0_2 = arith.constant 0 : index
    %2 = vector.load %arg1[%c0_1, %c0_2] : memref<8x128xf32, #tpu.memory_space<vmem>>, vector<8x128xf32>
    tpu.vector_store %arg1[%c0_1, %c0_2], %1 {strides = array<i32>} : memref<8x128xf32, #tpu.memory_space<vmem>>, vector<8x128xf32>,
    return
  }
}

</mosaic_0001>

<bundles_post_ra>
// kernel: tpu_custom_call.1
= control target key start
LH: loop header
LB: loop body
LE: loop exit
PB: predicated region body
PF: predicated region fallthrough
CT: control target
= control target key end

     0   :  { %6 = vsyncpa [#allocation3], 0  ;;  %s106_s0 = inlined_call_operand.hbm [shape: f32[8,128], index: 0, kind: input, shape index: {}]   ;;  %s107_s1 = inlined_call_operand.hbm [shape: f32[8,128], index: 1, kind: output, shape index: {}]  }
   0x1   :  { %7 = vsyncpa [#allocation4], 0  ;;  %s87_s6 = smov [#allocation2]  }
   0x2   :  { %s14_s7 = sshll.u32 %s87_s6, 4  ;;  %s15_s7 = int_to_ptr.vmem [resolvable:$true] %s14_s7 }
   0x3   :  { %s51_s8 = scalar_lea.vmem %s15_s7, 128  ;;  %p56_p1 = scmp.lt.s32.totalorder %s15_s7, %s15_s7 }
   0x4   :  { %p52_p0 = scmp.ne.s32.totalorder %s15_s7, %s51_s8  ;;  %p57_p2 = scmp.lt.s32.totalorder %s51_s8, %s51_s8 }
   0x6   :  { %p58_p3 = por %p57_p2, %p56_p1 }
   0x8   :  { %p59_p4 = pnand %p58_p3, %p52_p0 }
   0xa   :  { %62 = shalt.err (!%p59_p4)
}
   0xb   :  { %17 = dma.hbm_to_vmem [thread:$0]  %s106_s0, 128, %s15_s7, [#allocation3]  }
   0xc   :  { %83 = dma.done.wait [#allocation3], 128  }
   0xd   :  { %84 = vsyncadd [#allocation3], 4294967168  ;;  %v21_v0 = vld [vmem:[#allocation2] sm:$0xff]  ;;  %s88_s11 = smov 1   ;;  %s89_s12 = smov [#allocation5]  }
   0xe   :  { %22 = vrot.lane.b32.xlu0 %v21_v0, %s88_s11  ;;  %s31_s13 = sshll.u32 %s89_s12, 4  ;;  %s32_s13 = int_to_ptr.vmem [resolvable:$true] %s31_s13 }
   0xf   :  { %s63_s14 = scalar_lea.vmem %s32_s13, 128  ;;  %p68_p6 = scmp.lt.s32.totalorder %s32_s13, %s32_s13 }
  0x10   :  { %p64_p5 = scmp.ne.s32.totalorder %s32_s13, %s63_s14  ;;  %p69_p7 = scmp.lt.s32.totalorder %s63_s14, %s63_s14 }
  0x12   :  { %p70_p8 = por %p69_p7, %p68_p6 }
  0x14   :  { %p71_p9 = pnand %p70_p8, %p64_p5 }
  0x80   :  { %v23_v1 = vpop.permute.xlu0 %22 }
  0x81   :  { %24 = vst [vmem:[#allocation5] sm:$0xff] %v23_v1 }
  0x82   :  { %74 = shalt.err (!%p71_p9)
}
  0x83   :  { %34 = dma.vmem_to_hbm [thread:$0]  %s32_s13, 128, %s107_s1, [#allocation4]  }
  0x84   :  { %85 = dma.done.wait [#allocation4], 128  }
  0x85   :  { %86 = vsyncadd [#allocation4], 4294967168 }
  0x86   :  { %38 = vsyncpa [#allocation3], 1 }
  0x87   :  { %39 = vsyncpa [#allocation4], 1 }

</bundles_post_ra>
